<compile_context>
chip_gen: v7x
topology: tpu7x:2x2x1
jax: 0.10.0
libtpu: 0.0.40
codegen_flags: <defaults>
</compile_context>

<pallas_src>
import functools

import jax
import jax.numpy as jnp
from jax.experimental import pallas as pl
from jax.experimental.pallas import tpu as pltpu


def _round_up(x, m):
    return (x + m - 1) // m * m


# -----------------------------------------------------------------------------
# Kernel: fused [val | adv] 3-layer MLP on one batch tile.
# -----------------------------------------------------------------------------
def _fused_dueling_kernel(
    x_ref,       # (tb, sp)   bf16   current batch tile of states
    w_ref,       # (sp + cols + k3, cols) bf16  packed [W1; W2; W3] slab
    b_ref,       # (3, cols)  f32    packed biases
    o_ref,       # (tb, cols) f32    lane-dense [adv(0:A) | val(A) | pad]
    *,
    sp, cols, k3,
):
    x = x_ref[...]                                  # bf16
    w1 = w_ref[0:sp, :]                             # (sp,  cols)
    w2 = w_ref[sp:sp + cols, :]                     # (cols, cols)
    w3 = w_ref[sp + cols:sp + cols + k3, :]         # (k3,  cols)

    # Layer 1: columns [0:h1]=val, [h1:2h1]=adv, rest 0.
    h1 = jnp.maximum(
        jnp.dot(x, w1, preferred_element_type=jnp.float32) + b_ref[0:1, :], 0.0)
    # Layer 2: columns [0:h2]=val, [h2:2h2]=adv, rest 0.
    h2 = jnp.maximum(
        jnp.dot(h1.astype(w2.dtype), w2,
                preferred_element_type=jnp.float32) + b_ref[1:2, :], 0.0)
    # Layer 3 (reduced K = k3 = 2*h2 rounded to 8):
    #   columns [0:A] = advantage stream, [A] = value stream, rest 0.
    q = jnp.dot(h2[:, 0:k3].astype(w3.dtype), w3,
                preferred_element_type=jnp.float32) + b_ref[2:3, :]

    o_ref[...] = q


# -----------------------------------------------------------------------------
# One-time parameter packing (all transposes / fusion / padding / bf16 cast).
# -----------------------------------------------------------------------------
def pack_params(p, weight_dtype=jnp.bfloat16):
    """Pack PyTorch-shaped params into one block-diagonal weight slab."""
    h1 = p["w1_val"].shape[0]
    h2 = p["w2_val"].shape[0]
    state_size = p["w1_val"].shape[1]
    action_size = p["w3_adv"].shape[0]

    sp = _round_up(state_size, 8)
    cols = _round_up(max(2 * h1, 2 * h2, action_size + 1), 128)
    k3 = _round_up(2 * h2, 8)          # nonzero rows of W3 (<= cols by constr.)
    f32 = jnp.float32

    # Layer 1: x(sp) -> [h1_val | h1_adv | 0]
    w1 = jnp.zeros((sp, cols), f32)
    w1 = w1.at[:state_size, :h1].set(p["w1_val"].T.astype(f32))
    w1 = w1.at[:state_size, h1:2 * h1].set(p["w1_adv"].T.astype(f32))

    # Layer 2: block-diagonal -> [h2_val | h2_adv | 0]
    w2 = jnp.zeros((cols, cols), f32)
    w2 = w2.at[:h1, :h2].set(p["w2_val"].T.astype(f32))
    w2 = w2.at[h1:2 * h1, h2:2 * h2].set(p["w2_adv"].T.astype(f32))

    # Layer 3 (only its k3 nonzero input rows): -> [adv(0:A) | val(A) | 0]
    w3 = jnp.zeros((k3, cols), f32)
    w3 = w3.at[h2:2 * h2, :action_size].set(p["w3_adv"].T.astype(f32))
    w3 = w3.at[:h2, action_size:action_size + 1].set(p["w3_val"].T.astype(f32))

    wslab = jnp.concatenate([w1, w2, w3], axis=0).astype(weight_dtype)

    bias = jnp.zeros((3, cols), f32)
    bias = bias.at[0, :h1].set(p["b1_val"].astype(f32))
    bias = bias.at[0, h1:2 * h1].set(p["b1_adv"].astype(f32))
    bias = bias.at[1, :h2].set(p["b2_val"].astype(f32))
    bias = bias.at[1, h2:2 * h2].set(p["b2_adv"].astype(f32))
    bias = bias.at[2, :action_size].set(p["b3_adv"].astype(f32))
    bias = bias.at[2, action_size].set(p["b3_val"][0].astype(f32))

    return {
        "wslab": wslab, "bias": bias,
        "state_size": state_size, "state_padded": sp,
        "cols": cols, "action_size": action_size, "k3": k3,
    }


# -----------------------------------------------------------------------------
# Wrapper
# -----------------------------------------------------------------------------
def qnetwork_fc_dueling(x, packed, *, tb=512):
    """Pallas forward of the dueling QNetwork_FC on pre-packed params."""
    batch, s = x.shape
    sp = packed["state_padded"]
    cols = packed["cols"]
    action_size = packed["action_size"]
    k3 = packed["k3"]
    assert s == packed["state_size"]

    if sp != s:                                   # only if state_size % 8 != 0
        x = jnp.pad(x, ((0, 0), (0, sp - s)))

    tb = min(_round_up(tb, 8), _round_up(batch, 8))
    bp = _round_up(batch, tb)
    if bp != batch:
        x = jnp.pad(x, ((0, bp - batch), (0, 0)))
    nbt = bp // tb

    xb = x.astype(packed["wslab"].dtype)          # bf16 input: halves x DMA

    kernel = functools.partial(
        _fused_dueling_kernel, sp=sp, cols=cols, k3=k3)

    # TODO(synk): mark wslab/bias with pipeline_mode=pl.Buffered(1) once the
    # single-buffer mode is confirmed on the target jax version (saves ~100 KiB
    # of redundant double-buffering for grid-invariant operands).
    q = pl.pallas_call(
        kernel,
        out_shape=jax.ShapeDtypeStruct((bp, cols), jnp.float32),
        grid_spec=pltpu.PrefetchScalarGridSpec(
            num_scalar_prefetch=0,
            grid=(nbt,),                          # independent batch tiles
            in_specs=[
                pl.BlockSpec((tb, sp), lambda b: (b, 0)),
                pl.BlockSpec(packed["wslab"].shape, lambda b: (0, 0)),
                pl.BlockSpec(packed["bias"].shape, lambda b: (0, 0)),
            ],
            out_specs=pl.BlockSpec((tb, cols), lambda b: (b, 0)),
        ),
        compiler_params=pltpu.CompilerParams(
            dimension_semantics=("parallel",),    # shards across v7x's 2 TCs
            vmem_limit_bytes=32 * 1024 * 1024),
    )(xb, packed["wslab"], packed["bias"])

    # Dueling combine (exact PyTorch semantics: GLOBAL adv.mean()) in f32.
    q = q[:batch]
    adv = q[:, :action_size]
    val = q[:, action_size:action_size + 1]
    return adv + val - jnp.mean(adv)


# -----------------------------------------------------------------------------
# Deterministic synthetic params + plain-JAX reference
# -----------------------------------------------------------------------------
def init_params(key, state_size, action_size, hidsize1=64, hidsize2=32):
    """PyTorch nn.Linear shapes: W (out, in), b (out,)."""
    keys = jax.random.split(key, 12)
    shapes = {
        "w1_val": (hidsize1, state_size), "b1_val": (hidsize1,),
        "w2_val": (hidsize2, hidsize1),   "b2_val": (hidsize2,),
        "w3_val": (1, hidsize2),          "b3_val": (1,),
        "w1_adv": (hidsize1, state_size), "b1_adv": (hidsize1,),
        "w2_adv": (hidsize2, hidsize1),   "b2_adv": (hidsize2,),
        "w3_adv": (action_size, hidsize2),"b3_adv": (action_size,),
    }
    params = {}
    for k, (name, shp) in zip(keys, shapes.items()):
        params[name] = (0.1 * jax.random.normal(k, shp)).astype(jnp.float32)
    return params


def reference_forward(x, p):
    def lin(h, w, b):
        return h @ w.T + b
    val = jax.nn.relu(lin(x, p["w1_val"], p["b1_val"]))
    val = jax.nn.relu(lin(val, p["w2_val"], p["b2_val"]))
    val = lin(val, p["w3_val"], p["b3_val"])
    adv = jax.nn.relu(lin(x, p["w1_adv"], p["b1_adv"]))
    adv = jax.nn.relu(lin(adv, p["w2_adv"], p["b2_adv"]))
    adv = lin(adv, p["w3_adv"], p["b3_adv"])
    return adv + val - adv.mean()


# TODO(synk): the non-dueling (dueling=False) 3-layer MLP branch of QNetwork_FC
# is not implemented; this kernel covers the default dueling architecture.

if __name__ == "__main__":
    state_size, action_size = 16, 4
    batch = 32

    key = jax.random.PRNGKey(0)
    kx, kp = jax.random.split(key)
    x = jax.random.normal(kx, (batch, state_size), dtype=jnp.float32)
    params = init_params(kp, state_size, action_size)
    packed = pack_params(params)     # one-time packing (not in per-call path)

    # Default path: whole (padded) batch in a single grid step.
    out = jax.block_until_ready(qnetwork_fc_dueling(x, packed))
    # Tiled path: tb=16 -> 2 independent batch tiles (exercises the grid).
    out_tiled = jax.block_until_ready(qnetwork_fc_dueling(x, packed, tb=16))

    ref = reference_forward(x, params)
    assert out.shape == (batch, action_size)
    assert out_tiled.shape == (batch, action_size)
    err = float(jnp.max(jnp.abs(out - ref)))
    err_t = float(jnp.max(jnp.abs(out_tiled - ref)))
    # bf16 weights/activations with f32 accumulation -> loosened tolerance.
    assert jnp.allclose(out, ref, atol=2e-2, rtol=2e-2), f"max abs err {err}"
    assert jnp.allclose(out_tiled, ref, atol=2e-2, rtol=2e-2), f"max abs err {err_t}"

    print("KERNEL_OK")
</pallas_src>

<mosaic_0001>
module attributes {stable_mosaic.version = 11 : i64} {
  func.func @_fused_dueling_kernel(%arg0: i32, %arg1: memref<32x16xbf16, #tpu.memory_space<vmem>>, %arg2: memref<208x128xbf16, #tpu.memory_space<vmem>>, %arg3: memref<3x128xf32, #tpu.memory_space<vmem>>, %arg4: memref<32x128xf32, #tpu.memory_space<vmem>>) attributes {dimension_semantics = [#tpu.dimension_semantics<parallel>], iteration_bounds = array<i64: 1>, scalar_prefetch = 0 : i64, scratch_operands = 0 : i64, tpu.core_type = #tpu.core_type<tc>, window_params = [{transform_indices = @transform_0, window_bounds = array<i64: 32, 16>}, {pipeline_mode = #tpu.pipeline_mode<synchronous>, transform_indices = @transform_1, window_bounds = array<i64: 208, 128>}, {pipeline_mode = #tpu.pipeline_mode<synchronous>, transform_indices = @transform_2, window_bounds = array<i64: 3, 128>}, {transform_indices = @transform_3, window_bounds = array<i64: 32, 128>}]} {
    %c0 = arith.constant 0 : index
    %c0_0 = arith.constant 0 : index
    %0 = vector.load %arg1[%c0, %c0_0] : memref<32x16xbf16, #tpu.memory_space<vmem>>, vector<32x16xbf16>
    %c0_1 = arith.constant 0 : index
    %c0_2 = arith.constant 0 : index
    %1 = vector.load %arg2[%c0_1, %c0_2] : memref<208x128xbf16, #tpu.memory_space<vmem>>, vector<16x128xbf16>
    %c16 = arith.constant 16 : index
    %c0_3 = arith.constant 0 : index
    %2 = vector.load %arg2[%c16, %c0_3] : memref<208x128xbf16, #tpu.memory_space<vmem>>, vector<128x128xbf16>
    %c144 = arith.constant 144 : index
    %c0_4 = arith.constant 0 : index
    %3 = vector.load %arg2[%c144, %c0_4] : memref<208x128xbf16, #tpu.memory_space<vmem>>, vector<64x128xbf16>
    %cst = arith.constant dense<0.000000e+00> : vector<32x128xf32>
    %4 = tpu.matmul %0, %1, %cst {dimension_numbers = #tpu.dot_dimension_numbers<[1], [0], [0], [1], [0, 0, 1, 1], [], []>} : vector<32x16xbf16>, vector<16x128xbf16>, vector<32x128xf32> -> vector<32x128xf32>
    %c0_5 = arith.constant 0 : index
    %c0_6 = arith.constant 0 : index
    %5 = vector.load %arg3[%c0_5, %c0_6] : memref<3x128xf32, #tpu.memory_space<vmem>>, vector<1x128xf32>
    %6 = vector.broadcast %5 : vector<1x128xf32> to vector<32x128xf32>
    %7 = arith.addf %4, %6 : vector<32x128xf32>
    %cst_7 = arith.constant 0.000000e+00 : f32
    %8 = vector.broadcast %cst_7 : f32 to vector<32x128xf32>
    %9 = arith.maximumf %7, %8 : vector<32x128xf32>
    %10 = arith.truncf %9 : vector<32x128xf32> to vector<32x128xbf16>
    %cst_8 = arith.constant dense<0.000000e+00> : vector<32x128xf32>
    %11 = tpu.matmul %10, %2, %cst_8 {dimension_numbers = #tpu.dot_dimension_numbers<[1], [0], [0], [1], [0, 0, 1, 1], [], []>} : vector<32x128xbf16>, vector<128x128xbf16>, vector<32x128xf32> -> vector<32x128xf32>
    %c1 = arith.constant 1 : index
    %c0_9 = arith.constant 0 : index
    %12 = vector.load %arg3[%c1, %c0_9] : memref<3x128xf32, #tpu.memory_space<vmem>>, vector<1x128xf32>
    %13 = vector.broadcast %12 : vector<1x128xf32> to vector<32x128xf32>
    %14 = arith.addf %11, %13 : vector<32x128xf32>
    %cst_10 = arith.constant 0.000000e+00 : f32
    %15 = vector.broadcast %cst_10 : f32 to vector<32x128xf32>
    %16 = arith.maximumf %14, %15 : vector<32x128xf32>
    %17 = vector.extract_strided_slice %16 {offsets = [0, 0], sizes = [32, 64], strides = [1, 1]} : vector<32x128xf32> to vector<32x64xf32>
    %18 = arith.truncf %17 : vector<32x64xf32> to vector<32x64xbf16>
    %cst_11 = arith.constant dense<0.000000e+00> : vector<32x128xf32>
    %19 = tpu.matmul %18, %3, %cst_11 {dimension_numbers = #tpu.dot_dimension_numbers<[1], [0], [0], [1], [0, 0, 1, 1], [], []>} : vector<32x64xbf16>, vector<64x128xbf16>, vector<32x128xf32> -> vector<32x128xf32>
    %c2 = arith.constant 2 : index
    %c0_12 = arith.constant 0 : index
    %20 = vector.load %arg3[%c2, %c0_12] : memref<3x128xf32, #tpu.memory_space<vmem>>, vector<1x128xf32>
    %21 = vector.broadcast %20 : vector<1x128xf32> to vector<32x128xf32>
    %22 = arith.addf %19, %21 : vector<32x128xf32>
    %c0_13 = arith.constant 0 : index
    %c0_14 = arith.constant 0 : index
    %23 = vector.load %arg4[%c0_13, %c0_14] : memref<32x128xf32, #tpu.memory_space<vmem>>, vector<32x128xf32>
    tpu.vector_store %arg4[%c0_13, %c0_14], %22 {strides = array<i32>} : memref<32x128xf32, #tpu.memory_space<vmem>>, vector<32x128xf32>,
    return
  }
  func.func @transform_0(%arg0: i32) -> (i32, i32) {
    %c0_i32 = arith.constant 0 : i32
    %c0_i32_0 = arith.constant 0 : i32
    return %arg0, %c0_i32 : i32, i32
  }
  func.func @transform_1(%arg0: i32) -> (i32, i32) {
    %c0_i32 = arith.constant 0 : i32
    %c0_i32_0 = arith.constant 0 : i32
    %c0_i32_1 = arith.constant 0 : i32
    return %c0_i32, %c0_i32_0 : i32, i32
  }
  func.func @transform_2(%arg0: i32) -> (i32, i32) {
    %c0_i32 = arith.constant 0 : i32
    %c0_i32_0 = arith.constant 0 : i32
    %c0_i32_1 = arith.constant 0 : i32
    return %c0_i32, %c0_i32_0 : i32, i32
  }
  func.func @transform_3(%arg0: i32) -> (i32, i32) {
    %c0_i32 = arith.constant 0 : i32
    %c0_i32_0 = arith.constant 0 : i32
    return %arg0, %c0_i32 : i32, i32
  }
}

</mosaic_0001>

<bundles_post_ra>
// kernel: tpu_custom_call.1
= control target key start
LH: loop header
LB: loop body
LE: loop exit
PB: predicated region body
PF: predicated region fallthrough
CT: control target
= control target key end

     0   :  { %8 = vsyncpa [#allocation3], 0  ;;  %s570_s0 = inlined_call_operand.vmem [shape: bf16[32,16], index: 0, kind: input, shape index: {}]   ;;  %s571_s1 = inlined_call_operand.hbm [shape: bf16[208,128], index: 1, kind: input, shape index: {}]   ;;  %s572_s2 = inlined_call_operand.vmem [shape: f32[3,128], index: 2, kind: input, shape index: {}]   ;;  %s573_s3 = inlined_call_operand.hbm [shape: f32[32,128], index: 3, kind: output, shape index: {}]  }
   0x1   :  { %9 = vsyncpa [#allocation4], 0  ;;  %s505_s12 = smov [#allocation2]   ;;  %s457_s16 = scalar_lea.hbm %s571_s1, 1664 }
   0x2   :  { %s17_s13 = sshll.u32 %s505_s12, 4  ;;  %p458_p0 = scmp.ne.s32.totalorder %s571_s1, %s457_s16  ;;  %s18_s13 = int_to_ptr.vmem [resolvable:$true] %s17_s13 }
   0x3   :  { %p461_p1 = scmp.lt.u32.totalorder %s457_s16, %s571_s1 }
   0x5   :  { %p463_p2 = pnand %p461_p1, %p458_p0 }
   0x7   :  { %466 = shalt.err (!%p463_p2)
}
   0x8   :  { %s467_s21 = scalar_lea.vmem %s18_s13, 1664  ;;  %p472_p4 = scmp.lt.s32.totalorder %s18_s13, %s18_s13 }
   0x9   :  { %p468_p3 = scmp.ne.s32.totalorder %s18_s13, %s467_s21  ;;  %p473_p5 = scmp.lt.s32.totalorder %s467_s21, %s467_s21 }
   0xb   :  { %p474_p6 = por %p473_p5, %p472_p4 }
   0xd   :  { %p475_p7 = pnand %p474_p6, %p468_p3 }
   0xf   :  { %478 = shalt.err (!%p475_p7)
}
  0x10   :  { %s506_s22 = smov 64   ;;  %s507_s23 = smov 4  }
  0x11   :  { %23 = dma.hbm_to_vmem [thread:$0]  %s571_s1, 1664, %s18_s13, [#allocation3], %s506_s22, %s506_s22, %s507_s23  }
  0x12   :  { %501 = dma.done.wait [#allocation3], 1664  }
  0x13   :  { %502 = vsyncadd [#allocation3], 4294965632  ;;  %v442_v0 = vld [vmem:[#allocation2] sm:$0xff]   ;;  %vm81_vm0 = vcmask 130048   ;;  %v443_v1 = vld [vmem:[%s570_s0] sm:$0xff]   ;;  %vm280_vm1 = vcmask 523264  }
  0x14   :  { %398 = vmatprep.subr.bf16.mxu0 %v442_v0  ;;  %v444_v2 = vld [vmem:[%s570_s0 + $0x8] sm:$0xff]   ;;  %400 = vmatprep.mubr.msk.bf16.mxu0 %vm81_vm0, %v443_v1  ;;  %v445_v3 = vld [vmem:[#allocation2 + $0x8] sm:$0xff]   ;;  %v446_v4 = vld [vmem:[#allocation2 + $0x10] sm:$0xff]   ;;  %s508_s7 = smov [#allocation5]  }
  0x15   :  { %399 = vmatpush3.bf16.msra.mxu0 %v442_v0  ;;  %404 = vmatprep.subr.bf16.mxu1 %v445_v3  ;;  %v447_v5 = vld [vmem:[#allocation2 + $0x18] sm:$0xff]   ;;  %v448_v6 = vld [vmem:[#allocation2 + $0x20] sm:$0xff]   ;;  %v449_v7 = vld [vmem:[#allocation2 + $0x28] sm:$0xff]   ;;  %s345_s8 = sshll.u32 %s508_s7, 4  ;;  %s346_s8 = int_to_ptr.vmem [resolvable:$true] %s345_s8 }
  0x16   :  { %405 = vmatpush3.bf16.msra.mxu1 %v445_v3  ;;  %v450_v8 = vld [vmem:[#allocation2 + $0x30] sm:$0xff]   ;;  %v451_v9 = vld [vmem:[#allocation2 + $0x38] sm:$0xff]   ;;  %v452_v10 = vld [vmem:[#allocation2 + $0x40] sm:$0xff]   ;;  %s479_s9 = scalar_lea.vmem %s346_s8, 512  ;;  %p484_p9 = scmp.lt.s32.totalorder %s346_s8, %s346_s8 }
  0x17   :  { %406 = vmatprep.subr.bf16.mxu1 %v446_v4  ;;  %v453_v11 = vld [vmem:[#allocation2 + $0x48] sm:$0xff]   ;;  %v454_v12 = vld [vmem:[#allocation2 + $0x50] sm:$0xff]   ;;  %v455_v28 = vld [vmem:[#allocation2 + $0x58] sm:$0xff]   ;;  %p480_p8 = scmp.ne.s32.totalorder %s346_s8, %s479_s9  ;;  %p485_p10 = scmp.lt.s32.totalorder %s479_s9, %s479_s9 }
  0x18   :  { %401 = vmatmul.mubr.msk.bf16.vlgmr.msra.gmra.mrb[0].mxu0 %vm81_vm0, %v444_v2  ;;  %424 = vmatprep.subr.bf16.mxu0 %v453_v11  ;;  %v357_v13 = vld [vmem:[%s572_s2] ss:$0 sm:$0xff]  ;;  %v456_v29 = vld [vmem:[#allocation2 + $0x60] sm:$0xff]   ;;  %v363_v30 = vld [vmem:[%s572_s2 + $0x1] ss:$0 sm:$0xff] }
  0x19   :  { %425 = vmatpush3.bf16.msra.mxu0 %v453_v11  ;;  %v372_v45 = vld [vmem:[%s572_s2 + $0x2] ss:$0 sm:$0xff]  ;;  %p486_p11 = por %p485_p10, %p484_p9 }
  0x1a   :  { %407 = vmatpush3.bf16.msra.mxu1 %v446_v4  ;;  %426 = vmatprep.subr.bf16.mxu0 %v454_v12 }
  0x1b   :  { %408 = vmatprep.subr.bf16.mxu1 %v447_v5  ;;  %p487_p12 = pnand %p486_p11, %p480_p8 }
  0x1d   :  { %427 = vmatpush3.bf16.msra.mxu0 %v454_v12 }
  0x1e   :  { %409 = vmatpush3.bf16.msra.mxu1 %v447_v5  ;;  %428 = vmatprep.subr.bf16.mxu0 %v455_v28 }
  0x1f   :  { %410 = vmatprep.subr.bf16.mxu1 %v448_v6 }
  0x21   :  { %429 = vmatpush3.bf16.msra.mxu0 %v455_v28 }
  0x22   :  { %411 = vmatpush3.bf16.msra.mxu1 %v448_v6  ;;  %430 = vmatprep.subr.bf16.mxu0 %v456_v29 }
  0x23   :  { %412 = vmatprep.subr.bf16.mxu1 %v449_v7 }
  0x25   :  { %431 = vmatpush3.bf16.msra.mxu0 %v456_v29 }
  0x26   :  { %413 = vmatpush3.bf16.msra.mxu1 %v449_v7 }
  0x27   :  { %414 = vmatprep.subr.bf16.mxu1 %v450_v8 }
  0x2a   :  { %415 = vmatpush3.bf16.msra.mxu1 %v450_v8 }
  0x2b   :  { %416 = vmatprep.subr.bf16.mxu1 %v451_v9 }
  0x2e   :  { %417 = vmatpush3.bf16.msra.mxu1 %v451_v9 }
  0x2f   :  { %418 = vmatprep.subr.bf16.mxu1 %v452_v10 }
  0x32   :  { %419 = vmatpush3.bf16.msra.mxu1 %v452_v10 }
  0xeb   :  { %v402_v14 = vpop.f32.mrb[0].mxu0 }
  0xec   :  { %v131_v15 = vadd.f32 %v402_v14, %v357_v13  ;;  %v122_v16 = vpop.f32.mrb[1].mxu0 }
  0xed   :  { %v123_v17 = vadd.f32 %v357_v13, %v122_v16  ;;  %v403_v18 = vpop.f32.mrb[2].mxu0 }
  0xee   :  { %v134_v19 = vadd.f32 %v403_v18, %v357_v13  ;;  %v125_v20 = vpop.f32.mrb[3].mxu0  ;;  %v139_v22 = vmax.f32 %v131_v15, 0.0 }
  0xef   :  { %v126_v21 = vadd.f32 %v357_v13, %v125_v20  ;;  %v137_v24 = vmax.f32 %v123_v17, 0.0 }
  0xf0   :  { %v140_v23 = vmax.f32 %v134_v19, 0.0 }
  0xf1   :  { %v138_v25 = vmax.f32 %v126_v21, 0.0 }
  0xf2   :  { %v142_v26 = vpack.c.bf16 %v140_v23, %v139_v22 }
  0xf3   :  { %v141_v27 = vpack.c.bf16 %v138_v25, %v137_v24 }
  0xf5   :  { %420 = vmatprep.mubr.bf16.mxu1 %v141_v27 }
  0xf6   :  { %421 = vmatmul.mubr.bf16.vlgmr.msra.gmra.mrb[0].mxu1 %v142_v26 }
 0x1c9   :  { %v422_v31 = vpop.f32.mrb[0].mxu1 }
 0x1ca   :  { %v239_v32 = vadd.f32 %v422_v31, %v363_v30  ;;  %v230_v33 = vpop.f32.mrb[1].mxu1 }
 0x1cb   :  { %v231_v34 = vadd.f32 %v363_v30, %v230_v33  ;;  %v423_v35 = vpop.f32.mrb[2].mxu1 }
 0x1cc   :  { %v242_v36 = vadd.f32 %v423_v35, %v363_v30  ;;  %v233_v37 = vpop.f32.mrb[3].mxu1  ;;  %v247_v39 = vmax.f32 %v239_v32, 0.0 }
 0x1cd   :  { %v234_v38 = vadd.f32 %v363_v30, %v233_v37  ;;  %v245_v41 = vmax.f32 %v231_v34, 0.0 }
 0x1ce   :  { %v248_v40 = vmax.f32 %v242_v36, 0.0 }
 0x1cf   :  { %v246_v42 = vmax.f32 %v234_v38, 0.0 }
 0x1d0   :  { %v250_v43 = vpack.c.bf16 %v248_v40, %v247_v39 }
 0x1d1   :  { %v249_v44 = vpack.c.bf16 %v246_v42, %v245_v41 }
 0x1d3   :  { %432 = vmatprep.mubr.msk.bf16.mxu0 %vm280_vm1, %v249_v44 }
 0x1d4   :  { %433 = vmatmul.mubr.msk.bf16.vlgmr.msra.gmra.mrb[4].mxu0 %vm280_vm1, %v250_v43 }
 0x2a7   :  { %v434_v46 = vpop.f32.mrb[4].mxu0 }
 0x2a8   :  { %v330_v47 = vadd.f32 %v434_v46, %v372_v45  ;;  %v321_v48 = vpop.f32.mrb[5].mxu0 }
 0x2a9   :  { %v322_v49 = vadd.f32 %v372_v45, %v321_v48  ;;  %v435_v50 = vpop.f32.mrb[6].mxu0 }
 0x2aa   :  { %338 = vst [vmem:[#allocation5 + $0x10] sm:$0xff] %v330_v47  ;;  %v333_v51 = vadd.f32 %v435_v50, %v372_v45  ;;  %v324_v52 = vpop.f32.mrb[7].mxu0 }
 0x2ab   :  { %336 = vst [vmem:[#allocation5] sm:$0xff] %v322_v49  ;;  %v325_v53 = vadd.f32 %v372_v45, %v324_v52 }
 0x2ac   :  { %339 = vst [vmem:[#allocation5 + $0x18] sm:$0xff] %v333_v51 }
 0x2ad   :  { %337 = vst [vmem:[#allocation5 + $0x8] sm:$0xff] %v325_v53 }
 0x2ae   :  { %490 = shalt.err (!%p487_p12)
}
 0x2af   :  { %s491_s11 = scalar_lea.hbm %s573_s3, 512 }
 0x2b0   :  { %p492_p13 = scmp.ne.s32.totalorder %s573_s3, %s491_s11  ;;  %p495_p0 = scmp.lt.u32.totalorder %s491_s11, %s573_s3 }
 0x2b2   :  { %p497_p1 = pnand %p495_p0, %p492_p13 }
 0x2b4   :  { %500 = shalt.err (!%p497_p1)
}
 0x2b5   :  { %s509_s16 = smov 128   ;;  %s510_s17 = smov 8  }
 0x2b6   :  { %351 = dma.vmem_to_hbm [thread:$0]  %s346_s8, 512, %s573_s3, [#allocation4], %s509_s16, %s509_s16, %s510_s17  }
 0x2b7   :  { %503 = dma.done.wait [#allocation4], 512  }
 0x2b8   :  { %504 = vsyncadd [#allocation4], 4294966784 }
 0x2b9   :  { %355 = vsyncpa [#allocation3], 1 }
 0x2ba   :  { %356 = vsyncpa [#allocation4], 1 }

</bundles_post_ra>
